<compile_context>
chip_gen: v6e
topology: v6e:2x2x1
jax: 0.10.0
libtpu: 0.0.40
codegen_flags: <defaults>
</compile_context>

<pallas_src>
import functools
from typing import Dict, Tuple

import numpy as np
import jax
import jax.numpy as jnp
from jax.experimental import pallas as pl
from jax.experimental.pallas import tpu as pltpu

_LANES = 128
_DEFAULT_TILE_ROWS = 512  # 512*128*4B = 256 KiB per f32 input tile


def _cdiv(a: int, b: int) -> int:
    return -(-a // b)


def _round_up(a: int, b: int) -> int:
    return _cdiv(a, b) * b


def _focal_weight(d, d2, gamma: float):
    """|d|**gamma with VPU-only fast paths for small integer gamma."""
    if gamma == 0.0:
        return jnp.ones_like(d)
    if gamma == 1.0:
        return jnp.abs(d)
    if gamma == 2.0:
        return d2
    if gamma == 3.0:
        return d2 * jnp.abs(d)
    if gamma == 4.0:
        return d2 * d2
    return jnp.abs(d) ** gamma  # general case -> EUP exp/log


def _focal_loss_kernel(p_ref, t_ref, w_ref, out_ref, *, gamma):
    j = pl.program_id(1)

    @pl.when(j == 0)
    def _():
        out_ref[...] = jnp.zeros_like(out_ref)

    # Cast once inside the kernel (free VPU filler; avoids wrapper-side HBM copy).
    d = p_ref[...].astype(jnp.float32) - t_ref[...].astype(jnp.float32)
    d2 = d * d
    focal = _focal_weight(d, d2, gamma)
    # alpha and the per-group mean normalisation are folded into w_ref.
    weighted = (focal * d2) * w_ref[...]

    # Reduce (tile_rows, 128) -> (8, 128) with plain vreg adds (VPU); the final
    # cross-lane reduce is deferred to the wrapper epilogue.
    tr = weighted.shape[0]
    out_ref[...] += jnp.sum(weighted.reshape(tr // 8, 8, _LANES), axis=0)


class HierarchicalFocalLossPallas:
    """JAX/Pallas port of HierarchicalFocalLoss.forward."""

    def __init__(self,
                 hierarchy_config: Dict[str, Tuple[str, int]],
                 alpha: float = 0.8,
                 gamma: float = 2.0,
                 class_weights: Dict[str, float] = None):
        self.alpha = float(alpha)
        self.gamma = float(gamma)
        if class_weights is None:
            total_classes = sum(n for _, n in hierarchy_config.values())
            class_weights = {name: n / total_classes
                             for name, (_, n) in hierarchy_config.items()}
        self.class_weights = class_weights
        # column ranges, same as _calculate_class_ranges
        self.class_ranges = {}
        start = 0
        for name, (_, n) in hierarchy_config.items():
            self.class_ranges[name] = (start, start + n)
            start += n
        self.num_classes = start
        self._plan_cache = {}  # per-batch-size launch plan + cached weight array

    # ---- host-side precomputation (numpy; cached per batch size) -------------
    def _column_weights(self, batch: int) -> np.ndarray:
        w = np.zeros((self.num_classes,), np.float32)
        for name, (s, e) in self.class_ranges.items():
            group_size = e - s
            w[s:e] = self.alpha * self.class_weights[name] / (batch * group_size)
        return w

    def _plan(self, batch: int):
        if batch in self._plan_cache:
            return self._plan_cache[batch]
        C = self.num_classes
        n = batch * C
        rows_needed = _cdiv(n, _LANES)
        tile_rows = min(_DEFAULT_TILE_ROWS, _round_up(rows_needed, 8))
        num_tiles = _cdiv(rows_needed, tile_rows)
        num_parts = 2 if num_tiles >= 2 else 1          # megacore partial sums
        tiles_per_part = _cdiv(num_tiles, num_parts)
        total_rows = num_parts * tiles_per_part * tile_rows
        padded_n = total_rows * _LANES

        w_col = self._column_weights(batch)
        tile_elems = tile_rows * _LANES
        periodic = (tile_elems % C == 0)
        if periodic:
            # One tile of weights covers every tile (pattern has period C and
            # every tile starts at a multiple of C).  Padding is harmless: the
            # padded preds/targets are zero, so d = 0 -> contribution 0.
            w_arr = jnp.asarray(
                np.tile(w_col, tile_elems // C).reshape(tile_rows, _LANES))
        else:
            flat_w = np.zeros((padded_n,), np.float32)
            flat_w[:n] = np.tile(w_col, batch)
            w_arr = jnp.asarray(flat_w.reshape(total_rows, _LANES))

        plan = (tile_rows, num_parts, tiles_per_part, total_rows,
                padded_n, periodic, w_arr)
        self._plan_cache[batch] = plan
        return plan

    # ---- forward --------------------------------------------------------------
    def __call__(self, preds: jnp.ndarray, targets: jnp.ndarray) -> jnp.ndarray:
        assert preds.shape == targets.shape
        B, C = preds.shape
        assert C == self.num_classes
        (tile_rows, num_parts, tiles_per_part, total_rows,
         padded_n, periodic, w_arr) = self._plan(B)
        n = B * C

        def to_rows(x):
            flat = x.reshape(-1)
            if padded_n != n:
                flat = jnp.pad(flat, (0, padded_n - n))   # zero pad -> d = 0
            return flat.reshape(total_rows, _LANES)

        p2 = to_rows(preds)      # native dtype, no wrapper upcast
        t2 = to_rows(targets)

        def data_map(p, j):
            return (p * tiles_per_part + j, 0)

        w_map = (lambda p, j: (0, 0)) if periodic else data_map

        kernel = functools.partial(_focal_loss_kernel, gamma=self.gamma)
        partial_sums = pl.pallas_call(
            kernel,
            grid=(num_parts, tiles_per_part),
            in_specs=[
                pl.BlockSpec((tile_rows, _LANES), data_map),   # preds
                pl.BlockSpec((tile_rows, _LANES), data_map),   # targets
                pl.BlockSpec((tile_rows, _LANES), w_map),      # per-elem weights
            ],
            out_specs=pl.BlockSpec((8, _LANES), lambda p, j: (p, 0)),
            out_shape=jax.ShapeDtypeStruct((num_parts * 8, _LANES), jnp.float32),
            compiler_params=pltpu.CompilerParams(
                dimension_semantics=("parallel", "arbitrary")),
        )(p2, t2, w_arr)

        # Tiny epilogue reduce of the per-part (8,128) partial accumulators.
        return jnp.sum(partial_sums)

    # pure-JAX reference mirroring the PyTorch forward literally
    def reference(self, preds, targets):
        preds = preds.astype(jnp.float32)
        targets = targets.astype(jnp.float32)
        losses = (preds - targets) ** 2
        focal = jnp.abs(preds - targets) ** self.gamma
        losses = self.alpha * focal * losses
        total = 0.0
        for name, (s, e) in self.class_ranges.items():
            total += self.class_weights[name] * jnp.mean(losses[:, s:e])
        return total


if __name__ == "__main__":
    # Small synthetic hierarchy: 3 + 2 + 3 = 8 output columns.
    hierarchy_config = {
        "smooth":   ("root",   3),
        "features": ("smooth", 2),
        "edge_on":  ("root",   3),
    }
    loss_fn = HierarchicalFocalLossPallas(hierarchy_config, alpha=0.8, gamma=2.0)
    C = loss_fn.num_classes
    key = jax.random.PRNGKey(0)

    # 1) Small shape consistent with the module: (batch=8, num_classes=8).
    B = 8
    kp, kt = jax.random.split(key)
    preds = jax.nn.sigmoid(jax.random.normal(kp, (B, C), dtype=jnp.float32))
    targets = jax.nn.sigmoid(jax.random.normal(kt, (B, C), dtype=jnp.float32))
    out = jax.block_until_ready(loss_fn(preds, targets))
    ref = loss_fn.reference(preds, targets)
    assert jnp.allclose(out, ref, rtol=1e-5, atol=1e-6), (out, ref)

    # 2) Larger batch to exercise the tiled / padded / two-part (megacore) path.
    B2 = 20000
    kp2, kt2 = jax.random.split(jax.random.PRNGKey(1))
    preds2 = jax.nn.sigmoid(jax.random.normal(kp2, (B2, C), dtype=jnp.float32))
    targets2 = jax.nn.sigmoid(jax.random.normal(kt2, (B2, C), dtype=jnp.float32))
    out2 = jax.block_until_ready(loss_fn(preds2, targets2))
    ref2 = loss_fn.reference(preds2, targets2)
    assert jnp.allclose(out2, ref2, rtol=1e-4, atol=1e-7), (out2, ref2)

    print("KERNEL_OK")
</pallas_src>

<mosaic_0001>
module attributes {stable_mosaic.version = 11 : i64} {
  func.func @_focal_loss_kernel(%arg0: i32, %arg1: i32, %arg2: memref<8x128xf32, #tpu.memory_space<vmem>>, %arg3: memref<8x128xf32, #tpu.memory_space<vmem>>, %arg4: memref<8x128xf32, #tpu.memory_space<vmem>>, %arg5: memref<8x128xf32, #tpu.memory_space<vmem>>) attributes {dimension_semantics = [#tpu.dimension_semantics<parallel>, #tpu.dimension_semantics<arbitrary>], iteration_bounds = array<i64: 1, 1>, scalar_prefetch = 0 : i64, scratch_operands = 0 : i64, tpu.core_type = #tpu.core_type<tc>, window_params = [{transform_indices = @transform_0, window_bounds = array<i64: 8, 128>}, {transform_indices = @transform_1, window_bounds = array<i64: 8, 128>}, {pipeline_mode = #tpu.pipeline_mode<synchronous>, transform_indices = @transform_2, window_bounds = array<i64: 8, 128>}, {transform_indices = @transform_3, window_bounds = array<i64: 8, 128>}]} {
    %c0_i32 = arith.constant 0 : i32
    %0 = arith.cmpi eq, %arg1, %c0_i32 : i32
    %1 = arith.extui %0 : i1 to i32
    %c0_i32_0 = arith.constant 0 : i32
    %2 = arith.cmpi ne, %1, %c0_i32_0 : i32
    scf.if %2 {
      %cst_10 = arith.constant 0.000000e+00 : f32
      %15 = vector.broadcast %cst_10 : f32 to vector<8x128xf32>
      %c0_11 = arith.constant 0 : index
      %c0_12 = arith.constant 0 : index
      %16 = vector.load %arg5[%c0_11, %c0_12] : memref<8x128xf32, #tpu.memory_space<vmem>>, vector<8x128xf32>
      tpu.vector_store %arg5[%c0_11, %c0_12], %15 {strides = array<i32>} : memref<8x128xf32, #tpu.memory_space<vmem>>, vector<8x128xf32>,
    } else {
    }
    %c0 = arith.constant 0 : index
    %c0_1 = arith.constant 0 : index
    %3 = vector.load %arg2[%c0, %c0_1] : memref<8x128xf32, #tpu.memory_space<vmem>>, vector<8x128xf32>
    %c0_2 = arith.constant 0 : index
    %c0_3 = arith.constant 0 : index
    %4 = vector.load %arg3[%c0_2, %c0_3] : memref<8x128xf32, #tpu.memory_space<vmem>>, vector<8x128xf32>
    %5 = arith.subf %3, %4 : vector<8x128xf32>
    %6 = arith.mulf %5, %5 : vector<8x128xf32>
    %7 = arith.mulf %6, %6 : vector<8x128xf32>
    %c0_4 = arith.constant 0 : index
    %c0_5 = arith.constant 0 : index
    %8 = vector.load %arg4[%c0_4, %c0_5] : memref<8x128xf32, #tpu.memory_space<vmem>>, vector<8x128xf32>
    %9 = arith.mulf %7, %8 : vector<8x128xf32>
    %c0_6 = arith.constant 0 : index
    %c0_7 = arith.constant 0 : index
    %10 = vector.load %arg5[%c0_6, %c0_7] : memref<8x128xf32, #tpu.memory_space<vmem>>, vector<8x128xf32>
    %11 = vector.shape_cast %9 : vector<8x128xf32> to vector<1x8x128xf32>
    %cst = arith.constant dense<0.000000e+00> : vector<8x128xf32>
    %12 = vector.multi_reduction <add>, %11, %cst [0] : vector<1x8x128xf32> to vector<8x128xf32>
    %13 = arith.addf %10, %12 : vector<8x128xf32>
    %c0_8 = arith.constant 0 : index
    %c0_9 = arith.constant 0 : index
    %14 = vector.load %arg5[%c0_8, %c0_9] : memref<8x128xf32, #tpu.memory_space<vmem>>, vector<8x128xf32>
    tpu.vector_store %arg5[%c0_8, %c0_9], %13 {strides = array<i32>} : memref<8x128xf32, #tpu.memory_space<vmem>>, vector<8x128xf32>,
    return
  }
  func.func @transform_0(%arg0: i32, %arg1: i32) -> (i32, i32) {
    %c1_i32 = arith.constant 1 : i32
    %0 = arith.muli %arg0, %c1_i32 : i32
    %1 = arith.addi %0, %arg1 : i32
    %c0_i32 = arith.constant 0 : i32
    %c0_i32_0 = arith.constant 0 : i32
    return %1, %c0_i32 : i32, i32
  }
  func.func @transform_1(%arg0: i32, %arg1: i32) -> (i32, i32) {
    %c1_i32 = arith.constant 1 : i32
    %0 = arith.muli %arg0, %c1_i32 : i32
    %1 = arith.addi %0, %arg1 : i32
    %c0_i32 = arith.constant 0 : i32
    %c0_i32_0 = arith.constant 0 : i32
    return %1, %c0_i32 : i32, i32
  }
  func.func @transform_2(%arg0: i32, %arg1: i32) -> (i32, i32) {
    %c0_i32 = arith.constant 0 : i32
    %c0_i32_0 = arith.constant 0 : i32
    %c0_i32_1 = arith.constant 0 : i32
    return %c0_i32, %c0_i32_0 : i32, i32
  }
  func.func @transform_3(%arg0: i32, %arg1: i32) -> (i32, i32) {
    %c0_i32 = arith.constant 0 : i32
    %c0_i32_0 = arith.constant 0 : i32
    return %arg0, %c0_i32 : i32, i32
  }
}

</mosaic_0001>

<bundles_post_ra>
// kernel: tpu_custom_call.1
= control target key start
LH: loop header
LB: loop body
LE: loop exit
PB: predicated region body
PF: predicated region fallthrough
CT: control target
= control target key end

     0   :  { %8 = vsyncpa [#allocation3], 0  ;;  %s217_s0 = inlined_call_operand.hbm [shape: f32[8,128], index: 0, kind: input, shape index: {}]   ;;  %s218_s1 = inlined_call_operand.hbm [shape: f32[8,128], index: 1, kind: input, shape index: {}]   ;;  %s219_s2 = inlined_call_operand.hbm [shape: f32[8,128], index: 2, kind: input, shape index: {}]   ;;  %s220_s3 = inlined_call_operand.hbm [shape: f32[8,128], index: 3, kind: output, shape index: {}]  }
   0x1   :  { %9 = vsyncpa [#allocation6], 0 }
   0x2   :  { %10 = vsyncpa [#allocation4], 0  ;;  %s181_s12 = smov [#allocation5]   ;;  %s182_s14 = smov [#allocation2]  }
   0x3   :  { %s33_s13 = sshll.u32 %s181_s12, 4  ;;  %s20_s15 = sshll.u32 %s182_s14, 4  ;;  %s34_s13 = int_to_ptr.vmem [resolvable:$true] %s33_s13  ;;  %s21_s15 = int_to_ptr.vmem [resolvable:$true] %s20_s15 }
   0x4   :  { %s103_s16 = scalar_lea.vmem %s34_s13, 128  ;;  %p108_p1 = scmp.lt.s32.totalorder %s34_s13, %s34_s13 }
   0x5   :  { %p104_p0 = scmp.ne.s32.totalorder %s34_s13, %s103_s16  ;;  %p109_p2 = scmp.lt.s32.totalorder %s103_s16, %s103_s16 }
   0x7   :  { %p110_p3 = por %p109_p2, %p108_p1 }
   0x9   :  { %p111_p4 = pnand %p110_p3, %p104_p0 }
   0xb   :  { %114 = shalt.err (!%p111_p4)
}
   0xc   :  { %36 = dma.hbm_to_vmem [thread:$0]  %s218_s1, 128, %s34_s13, [#allocation6]  }
   0xd   :  { %s123_s19 = scalar_lea.vmem %s21_s15, 128  ;;  %p128_p6 = scmp.lt.s32.totalorder %s21_s15, %s21_s15 }
   0xe   :  { %p124_p5 = scmp.ne.s32.totalorder %s21_s15, %s123_s19  ;;  %p129_p7 = scmp.lt.s32.totalorder %s123_s19, %s123_s19 }
  0x10   :  { %p130_p8 = por %p129_p7, %p128_p6 }
  0x12   :  { %p131_p9 = pnand %p130_p8, %p124_p5 }
  0x14   :  { %134 = shalt.err (!%p131_p9)
}
  0x15   :  { %23 = dma.hbm_to_vmem [thread:$0]  %s217_s0, 128, %s21_s15, [#allocation3]  }
  0x16   :  { %s183_s22 = smov [#allocation7]  }
  0x17   :  { %s43_s23 = sshll.u32 %s183_s22, 4  ;;  %s44_s23 = int_to_ptr.vmem [resolvable:$true] %s43_s23 }
  0x18   :  { %s143_s24 = scalar_lea.vmem %s44_s23, 128  ;;  %p148_p11 = scmp.lt.s32.totalorder %s44_s23, %s44_s23 }
  0x19   :  { %p144_p10 = scmp.ne.s32.totalorder %s44_s23, %s143_s24  ;;  %p149_p12 = scmp.lt.s32.totalorder %s143_s24, %s143_s24 }
  0x1b   :  { %p150_p13 = por %p149_p12, %p148_p11 }
  0x1d   :  { %p151_p0 = pnand %p150_p13, %p144_p10 }
  0x1f   :  { %154 = shalt.err (!%p151_p0)
}
  0x20   :  { %46 = dma.hbm_to_vmem [thread:$0]  %s219_s2, 128, %s44_s23, [#allocation6]  }
  0x21   :  { %175 = dma.done.wait [#allocation3], 128  }
  0x22   :  { %176 = vsyncadd [#allocation3], 4294967168 }
  0x23   :  { %177 = dma.done.wait [#allocation6], 256  }
  0x24   :  { %178 = vsyncadd [#allocation6], 4294967040  ;;  %v63_v0 = vld [vmem:[#allocation2] sm:$0xff]  ;;  %v64_v1 = vld [vmem:[#allocation5] sm:$0xff]  ;;  %s184_s0 = smov [#allocation8]  }
  0x25   :  { %v65_v2 = vsub.f32 %v63_v0, %v64_v1  ;;  %v68_v4 = vld [vmem:[#allocation7] sm:$0xff]  ;;  %s80_s26 = sshll.u32 %s184_s0, 4  ;;  %s81_s26 = int_to_ptr.vmem [resolvable:$true] %s80_s26 }
  0x26   :  { %s155_s27 = scalar_lea.vmem %s81_s26, 128  ;;  %p160_p2 = scmp.lt.s32.totalorder %s81_s26, %s81_s26 }
  0x27   :  { %v66_v3 = vmul.f32 %v65_v2, %v65_v2  ;;  %p156_p1 = scmp.ne.s32.totalorder %s81_s26, %s155_s27  ;;  %p161_p3 = scmp.lt.s32.totalorder %s155_s27, %s155_s27 }
  0x29   :  { %v67_v5 = vmul.f32 %v66_v3, %v66_v3  ;;  %p162_p4 = por %p161_p3, %p160_p2 }
  0x2b   :  { %v69_v6 = vmul.f32 %v68_v4, %v67_v5  ;;  %p163_p5 = pnand %p162_p4, %p156_p1 }
  0x2d   :  { %73 = vst [vmem:[#allocation8] sm:$0xff] %v69_v6 }
  0x2e   :  { %166 = shalt.err (!%p163_p5)
}
  0x2f   :  { %83 = dma.vmem_to_hbm [thread:$0]  %s81_s26, 128, %s220_s3, [#allocation4]  }
  0x30   :  { %179 = dma.done.wait [#allocation4], 128  }
  0x31   :  { %180 = vsyncadd [#allocation4], 4294967168 }
  0x32   :  { %87 = vsyncpa [#allocation3], 1 }
  0x33   :  { %88 = vsyncpa [#allocation6], 1 }
  0x34   :  { %89 = vsyncpa [#allocation4], 1 }

</bundles_post_ra>
